<compile_context>
chip_gen: v7x
topology: tpu7x:2x2x1
jax: 0.10.0
libtpu: 0.0.40
codegen_flags: <defaults>
</compile_context>

<pallas_src>
import jax
import jax.numpy as jnp
from jax.experimental import pallas as pl
from jax.experimental.pallas import tpu as pltpu


def _h_swish_kernel(x_ref, o_ref):
    x = x_ref[...]
    # relu6(x + 3) / 6 == clamp(x + 3, 0, 6) / 6, computed in the input dtype.
    # (Divide kept instead of *(1/6) to match the PyTorch reference exactly;
    #  the EUP cost is fully hidden under the HBM DMA.)
    o_ref[...] = (x * (jnp.clip(x + 3.0, 0.0, 6.0) / 6.0)).astype(o_ref.dtype)


def _jax_h_swish(x):
    return x * (jnp.clip(x + 3.0, 0.0, 6.0) / 6.0)


def _choose_lanes(n, max_lanes=4096):
    """Largest multiple-of-128 divisor of n (<= max_lanes), preferring one that
    leaves at least 8 rows so the sublane dimension is populated.
    Requires n % 128 == 0 and n > 0 (always returns a valid value then)."""
    best = None
    for k in range(max_lanes // 128, 0, -1):
        lanes = 128 * k
        if n % lanes == 0:
            if best is None:
                best = lanes
            if n // lanes >= 8:
                return lanes
    return best


def h_swish(x, *, target_block_bytes=4 * 1024 * 1024, max_lanes=4096, donate=False):
    """Hard-swish with the exact semantics of the PyTorch module.

    Works for any shape / float dtype. `donate=True` aliases the output onto
    the input buffer (in-place style use inside MobileNet blocks).
    """
    orig_shape = x.shape
    orig_dtype = x.dtype
    n = x.size
    if n == 0:
        return x

    itemsize = jnp.dtype(orig_dtype).itemsize
    # Sublane packing multiple: 8 (f32), 16 (bf16/f16), 32 (int8/fp8).
    sub_mult = max(8, 32 // max(itemsize, 1))

    flat = x.reshape(n)

    # Split into a 128-aligned prefix (fast lane-dense Pallas path) and a
    # <128-element tail handled in plain JAX (no pad/slice round-trips).
    n_main = (n // 128) * 128
    tail = _jax_h_swish(flat[n_main:]) if n_main < n else None
    if n_main == 0:
        return tail.reshape(orig_shape)

    main = flat[:n_main] if n_main < n else flat
    lanes = _choose_lanes(n_main, max_lanes)
    rows = n_main // lanes
    x2 = main.reshape(rows, lanes)

    # Row tile: ~target_block_bytes per block buffer, multiple of sub_mult.
    tile_r = (target_block_bytes // (lanes * itemsize)) // sub_mult * sub_mult
    tile_r = max(sub_mult, tile_r)
    # Guarantee >= 2 grid steps whenever rows permits so both v7x TensorCores
    # get work under dimension_semantics=("parallel",). Negligible cost on
    # single-TC v5e/v6e.
    if rows >= 2 * sub_mult:
        tile_r = min(tile_r, (rows // 2) // sub_mult * sub_mult)
    tile_r = min(tile_r, rows)  # rows < tile_r -> block spans full dim (allowed)

    grid = (pl.cdiv(rows, tile_r),)  # partial trailing block is masked by Pallas

    # Explicit scoped-VMEM limit: 2-deep input + 2-deep output double-buffers
    # plus headroom; keeps big blocks compiling on v5e (16 MiB default) and
    # v7x (32 MiB default / 64 MiB physical).
    block_bytes = tile_r * lanes * itemsize
    vmem_limit = min(max(4 * block_bytes + (4 << 20), 16 << 20), 48 << 20)

    call_kwargs = {}
    if donate:
        call_kwargs["input_output_aliases"] = {0: 0}

    out = pl.pallas_call(
        _h_swish_kernel,
        out_shape=jax.ShapeDtypeStruct((rows, lanes), orig_dtype),
        grid_spec=pltpu.PrefetchScalarGridSpec(
            num_scalar_prefetch=0,
            grid=grid,
            in_specs=[pl.BlockSpec((tile_r, lanes), lambda i: (i, 0))],
            out_specs=pl.BlockSpec((tile_r, lanes), lambda i: (i, 0)),
        ),
        compiler_params=pltpu.CompilerParams(
            dimension_semantics=("parallel",),
            vmem_limit_bytes=vmem_limit,
        ),
        **call_kwargs,
    )(x2)

    out = out.reshape(n_main)
    if tail is not None:
        out = jnp.concatenate([out, tail])
    return out.reshape(orig_shape)


if __name__ == "__main__":
    key = jax.random.PRNGKey(0)
    k1, k2, k3 = jax.random.split(key, 3)

    # Main case: NCHW input, same convention as the PyTorch module.
    x = jax.random.normal(key, (2, 4, 16, 16), dtype=jnp.float32) * 4.0
    y = jax.block_until_ready(h_swish(x))
    y_ref = _jax_h_swish(x)
    assert y.shape == x.shape and y.dtype == x.dtype
    assert jnp.allclose(y, y_ref, atol=1e-6, rtol=1e-6)

    # Odd shape: element count not a multiple of 128 (exercises prefix + JAX tail).
    x_odd = jax.random.normal(k1, (3, 5, 7, 9), dtype=jnp.float32) * 4.0
    y_odd = jax.block_until_ready(h_swish(x_odd))
    assert jnp.allclose(y_odd, _jax_h_swish(x_odd), atol=1e-6, rtol=1e-6)

    # Multi-step grid with a partial (masked) trailing row block.
    x_tail = jax.random.normal(k2, (4, 5, 128), dtype=jnp.float32) * 4.0
    y_tail = jax.block_until_ready(h_swish(x_tail, target_block_bytes=8 * 1024))
    assert jnp.allclose(y_tail, _jax_h_swish(x_tail), atol=1e-6, rtol=1e-6)

    # bf16 path (dtype-aware sublane multiple; arithmetic stays in bf16).
    # Note: PyTorch's bf16 hardswish uses fp32 opmath internally, so results may
    # differ by a few ULPs (covered by the tolerance below).
    x_bf16 = (jax.random.normal(k3, (2, 4, 16, 16), dtype=jnp.float32) * 4.0).astype(jnp.bfloat16)
    y_bf16 = jax.block_until_ready(h_swish(x_bf16))
    assert y_bf16.dtype == jnp.bfloat16
    assert jnp.allclose(y_bf16.astype(jnp.float32),
                        _jax_h_swish(x_bf16).astype(jnp.float32),
                        atol=2e-2, rtol=2e-2)

    # Donated / in-place aliased variant.
    y_inplace = jax.block_until_ready(h_swish(x, donate=True))
    assert jnp.allclose(y_inplace, y_ref, atol=1e-6, rtol=1e-6)

    print("KERNEL_OK")
</pallas_src>

<mosaic_0001>
module attributes {stable_mosaic.version = 11 : i64} {
  func.func @_h_swish_kernel(%arg0: i32, %arg1: memref<8x256xf32, #tpu.memory_space<vmem>>, %arg2: memref<8x256xf32, #tpu.memory_space<vmem>>) attributes {dimension_semantics = [#tpu.dimension_semantics<parallel>], iteration_bounds = array<i64: 1>, scalar_prefetch = 0 : i64, scratch_operands = 0 : i64, tpu.core_type = #tpu.core_type<tc>, window_params = [{transform_indices = @transform_0, window_bounds = array<i64: 8, 256>}, {transform_indices = @transform_1, window_bounds = array<i64: 8, 256>}]} {
    %c0 = arith.constant 0 : index
    %c0_0 = arith.constant 0 : index
    %0 = vector.load %arg1[%c0, %c0_0] : memref<8x256xf32, #tpu.memory_space<vmem>>, vector<8x256xf32>
    %cst = arith.constant 3.000000e+00 : f32
    %1 = vector.broadcast %cst : f32 to vector<8x256xf32>
    %2 = arith.addf %0, %1 : vector<8x256xf32>
    %cst_1 = arith.constant 0.000000e+00 : f32
    %cst_2 = arith.constant 6.000000e+00 : f32
    %3 = vector.broadcast %cst_1 : f32 to vector<8x256xf32>
    %4 = arith.maximumf %3, %2 : vector<8x256xf32>
    %5 = vector.broadcast %cst_2 : f32 to vector<8x256xf32>
    %6 = arith.minimumf %5, %4 : vector<8x256xf32>
    %cst_3 = arith.constant 6.000000e+00 : f32
    %7 = vector.broadcast %cst_3 : f32 to vector<8x256xf32>
    %8 = arith.divf %6, %7 : vector<8x256xf32>
    %9 = arith.mulf %0, %8 : vector<8x256xf32>
    %c0_4 = arith.constant 0 : index
    %c0_5 = arith.constant 0 : index
    %10 = vector.load %arg2[%c0_4, %c0_5] : memref<8x256xf32, #tpu.memory_space<vmem>>, vector<8x256xf32>
    tpu.vector_store %arg2[%c0_4, %c0_5], %9 {strides = array<i32>} : memref<8x256xf32, #tpu.memory_space<vmem>>, vector<8x256xf32>,
    return
  }
  func.func @transform_0(%arg0: i32) -> (i32, i32) {
    %c0_i32 = arith.constant 0 : i32
    %c0_i32_0 = arith.constant 0 : i32
    return %arg0, %c0_i32 : i32, i32
  }
  func.func @transform_1(%arg0: i32) -> (i32, i32) {
    %c0_i32 = arith.constant 0 : i32
    %c0_i32_0 = arith.constant 0 : i32
    return %arg0, %c0_i32 : i32, i32
  }
}

</mosaic_0001>

<bundles_post_ra>
// kernel: tpu_custom_call.1
= control target key start
LH: loop header
LB: loop body
LE: loop exit
PB: predicated region body
PF: predicated region fallthrough
CT: control target
= control target key end

     0   :  { %6 = vsyncpa [#allocation3], 0  ;;  %s137_s0 = inlined_call_operand.hbm [shape: f32[8,256], index: 0, kind: input, shape index: {}]   ;;  %s138_s1 = inlined_call_operand.hbm [shape: f32[8,256], index: 1, kind: output, shape index: {}]  }
   0x1   :  { %7 = vsyncpa [#allocation4], 0  ;;  %s101_s6 = smov [#allocation2]   ;;  %s53_s10 = scalar_lea.hbm %s137_s0, 256 }
   0x2   :  { %s14_s7 = sshll.u32 %s101_s6, 4  ;;  %p54_p0 = scmp.ne.s32.totalorder %s137_s0, %s53_s10  ;;  %s15_s7 = int_to_ptr.vmem [resolvable:$true] %s14_s7 }
   0x3   :  { %p57_p1 = scmp.lt.u32.totalorder %s53_s10, %s137_s0 }
   0x5   :  { %p59_p2 = pnand %p57_p1, %p54_p0 }
   0x7   :  { %62 = shalt.err (!%p59_p2)
}
   0x8   :  { %s63_s15 = scalar_lea.vmem %s15_s7, 256  ;;  %p68_p4 = scmp.lt.s32.totalorder %s15_s7, %s15_s7 }
   0x9   :  { %p64_p3 = scmp.ne.s32.totalorder %s15_s7, %s63_s15  ;;  %p69_p5 = scmp.lt.s32.totalorder %s63_s15, %s63_s15 }
   0xb   :  { %p70_p6 = por %p69_p5, %p68_p4 }
   0xd   :  { %p71_p7 = pnand %p70_p6, %p64_p3 }
   0xf   :  { %74 = shalt.err (!%p71_p7)
}
  0x10   :  { %17 = dma.hbm_to_vmem [thread:$0]  %s137_s0, 256, %s15_s7, [#allocation3]  }
  0x11   :  { %97 = dma.done.wait [#allocation3], 256  }
  0x12   :  { %98 = vsyncadd [#allocation3], 4294967040  ;;  %v21_v0 = vld [vmem:[#allocation2] sm:$0xff]  ;;  %v22_v1 = vld [vmem:[#allocation2 + $0x8] sm:$0xff]  ;;  %s102_s18 = smov [#allocation5]  }
  0x13   :  { %v23_v2 = vadd.f32 3.0, %v21_v0  ;;  %v24_v3 = vadd.f32 3.0, %v22_v1  ;;  %s42_s19 = sshll.u32 %s102_s18, 4  ;;  %s43_s19 = int_to_ptr.vmem [resolvable:$true] %s42_s19 }
  0x14   :  { %s75_s0 = scalar_lea.vmem %s43_s19, 256  ;;  %p80_p9 = scmp.lt.s32.totalorder %s43_s19, %s43_s19 }
  0x15   :  { %v25_v4 = vmax.f32 %v23_v2, 0.0  ;;  %v26_v5 = vmax.f32 %v24_v3, 0.0  ;;  %p76_p8 = scmp.ne.s32.totalorder %s43_s19, %s75_s0  ;;  %p81_p10 = scmp.lt.s32.totalorder %s75_s0, %s75_s0 }
  0x17   :  { %v27_v6 = vmin.f32 %v25_v4, 6.0  ;;  %v28_v7 = vmin.f32 %v26_v5, 6.0  ;;  %p82_p11 = por %p81_p10, %p80_p9 }
  0x19   :  { %v30_v8 = vmul.f32 0.16666667, %v27_v6  ;;  %v31_v9 = vmul.f32 0.16666667, %v28_v7  ;;  %p83_p12 = pnand %p82_p11, %p76_p8 }
  0x1b   :  { %v32_v10 = vmul.f32 %v30_v8, %v21_v0  ;;  %v33_v11 = vmul.f32 %v31_v9, %v22_v1 }
  0x1d   :  { %34 = vst [vmem:[#allocation5] sm:$0xff] %v32_v10  ;;  %35 = vst [vmem:[#allocation5 + $0x8] sm:$0xff] %v33_v11 }
  0x1e   :  { %86 = shalt.err (!%p83_p12)
}
  0x1f   :  { %s87_s22 = scalar_lea.hbm %s138_s1, 256 }
  0x20   :  { %p88_p13 = scmp.ne.s32.totalorder %s138_s1, %s87_s22  ;;  %p91_p0 = scmp.lt.u32.totalorder %s87_s22, %s138_s1 }
  0x22   :  { %p93_p1 = pnand %p91_p0, %p88_p13 }
  0x24   :  { %96 = shalt.err (!%p93_p1)
}
  0x25   :  { %45 = dma.vmem_to_hbm [thread:$0]  %s43_s19, 256, %s138_s1, [#allocation4]  }
  0x26   :  { %99 = dma.done.wait [#allocation4], 256  }
  0x27   :  { %100 = vsyncadd [#allocation4], 4294967040 }
  0x28   :  { %49 = vsyncpa [#allocation3], 1 }
  0x29   :  { %50 = vsyncpa [#allocation4], 1 }

</bundles_post_ra>
